<compile_context>
chip_gen: v6e
topology: v6e:2x2x1
jax: 0.10.0
libtpu: 0.0.40
codegen_flags: <defaults>
</compile_context>

<pallas_src>
import functools
import json

import jax
import jax.numpy as jnp
from jax import lax
from jax.experimental import pallas as pl
from jax.experimental.pallas import tpu as pltpu


def _text_classifier_kernel(ids_ref, msk_ref, emb_ref, wt_ref, b_ref, out_ref,
                            acc_ref, cnt_ref, *, seq_len, inner_unroll):
    """One grid step = one TB-row batch tile.

    ids_ref : SMEM (B_pad*S,) int32   token ids (scalar prefetch, flattened)
    msk_ref : SMEM (B_pad*S,) int32   binary mask (scalar prefetch, flattened)
    emb_ref : VMEM (V, D)     f32     resident embedding table
    wt_ref  : VMEM (D, OP)    f32     fc weight, pre-transposed + lane-padded
    b_ref   : VMEM (1, OP)    f32     fc bias, lane-padded
    out_ref : VMEM (TB, OP)   f32     logits tile
    acc_ref : VMEM (TB, D)    f32     streamed mean-pool accumulator
    cnt_ref : VMEM (TB, 1)    f32     valid-token counts
    """
    g = pl.program_id(0)
    tb, d = acc_ref.shape

    # ---- encoder stand-in: streamed masked sum over tokens, per batch row ----
    @pl.loop(0, tb)
    def _(r):
        base = (g * tb + r) * seq_len          # no div/mod in the inner loop

        def body(s, carry):
            acc, cnt = carry
            tok = ids_ref[base + s]                        # scalar int32 (SMEM)
            m = msk_ref[base + s].astype(jnp.float32)      # scalar 0/1
            row = emb_ref[pl.ds(tok, 1), :]                # (1, D) dynamic VMEM row load
            return acc + m * row, cnt + m

        acc, cnt = lax.fori_loop(
            0, seq_len, body,
            (jnp.zeros((1, d), jnp.float32), jnp.zeros((1, 1), jnp.float32)),
            unroll=inner_unroll)
        acc_ref[pl.ds(r, 1), :] = acc
        cnt_ref[pl.ds(r, 1), :] = cnt

    # ---- mean pool (exact divide) + classifier head --------------------------
    hidden = acc_ref[...] / jnp.maximum(cnt_ref[...], 1.0)            # (TB, D) f32
    logits = jnp.dot(hidden, wt_ref[...],
                     preferred_element_type=jnp.float32) + b_ref[...]  # (TB, OP)
    out_ref[...] = logits.astype(out_ref.dtype)


def text_classifier_forward(input_ids, input_mask, embedding, fc_weight, fc_bias):
    B, S = input_ids.shape
    V, D = embedding.shape
    O = fc_weight.shape[0]

    # Batch tile: up to 64 rows per grid step (sublane-aligned).  For large B
    # this also keeps grid >= 2 so both v7x TensorCores get work.
    TB = min(64, max(8, 1 << max(B - 1, 1).bit_length()))
    B_pad = ((B + TB - 1) // TB) * TB
    # Lane-dense output width: 128, or a multiple of 256 once O > 128 so the
    # head matmul maps cleanly onto the 256-wide v6e/v7x MXU.
    OP = 128 if O <= 128 else ((O + 255) // 256) * 256

    # Resident-table budget (v7x has 64 MiB VMEM per TensorCore; keep the
    # double-buffered resident footprint comfortably below it).
    table_bytes = V * D * 4
    resident_bytes = (2 * (table_bytes + D * OP * 4 + OP * 4 + TB * OP * 4)
                      + TB * (D + 1) * 4)
    if resident_bytes > 40 * 1024 * 1024:
        # TODO(synk): large-vocab HBM-gather path (bounded DMA slot ring,
        #             pad-token skip, accumulate-on-arrival) not implemented.
        raise NotImplementedError("embedding table too large for resident-VMEM path")

    # Flattened 1D scalar-prefetch arrays (2D SMEM refs pad to [*, 128] words).
    # Ids are clamped to [0, V) so the dynamic row load can never go OOB.
    # NOTE: this maps bad ids to row V-1, unlike nn.Embedding (which errors).
    ids = jnp.clip(input_ids.astype(jnp.int32), 0, V - 1)
    mask = (input_mask != 0).astype(jnp.int32)             # binary mask assumption
    ids_flat = jnp.zeros((B_pad * S,), jnp.int32).at[:B * S].set(ids.reshape(-1))
    msk_flat = jnp.zeros((B_pad * S,), jnp.int32).at[:B * S].set(mask.reshape(-1))

    emb_f32 = embedding.astype(jnp.float32)
    w_t = jnp.zeros((D, OP), jnp.float32).at[:, :O].set(fc_weight.T.astype(jnp.float32))
    bias = jnp.zeros((1, OP), jnp.float32).at[:, :O].set(
        fc_bias.reshape(1, O).astype(jnp.float32))

    grid = (B_pad // TB,)
    kernel = functools.partial(_text_classifier_kernel,
                               seq_len=S, inner_unroll=min(S, 8))

    flops = 2 * B_pad * S * D + 2 * B_pad * D * OP
    bytes_accessed = (2 * B_pad * S * 4 + V * D * 4 + D * OP * 4 + OP * 4
                      + B_pad * OP * 4)

    logits_pad = pl.pallas_call(
        kernel,
        out_shape=jax.ShapeDtypeStruct((B_pad, OP), jnp.float32),
        grid_spec=pltpu.PrefetchScalarGridSpec(
            num_scalar_prefetch=2,                         # ids, mask -> SMEM
            grid=grid,
            in_specs=[
                pl.BlockSpec((V, D), lambda g, ids, msk: (0, 0)),    # table (resident)
                pl.BlockSpec((D, OP), lambda g, ids, msk: (0, 0)),   # W^T  (resident)
                pl.BlockSpec((1, OP), lambda g, ids, msk: (0, 0)),   # bias (resident)
            ],
            out_specs=pl.BlockSpec((TB, OP), lambda g, ids, msk: (g, 0)),
            scratch_shapes=[
                pltpu.VMEM((TB, D), jnp.float32),          # pooled accumulator
                pltpu.VMEM((TB, 1), jnp.float32),          # valid-token counts
            ],
        ),
        compiler_params=pltpu.CompilerParams(
            dimension_semantics=("parallel",),             # batch tiles independent
            vmem_limit_bytes=int(min(64 * 1024 * 1024,
                                     max(16 * 1024 * 1024,
                                         resident_bytes + (2 << 20)))),
        ),
        cost_estimate=pl.CostEstimate(
            flops=flops, transcendentals=0, bytes_accessed=bytes_accessed),
    )(ids_flat, msk_flat, emb_f32, w_t, bias)

    # forward() returns a dict; labels=None -> loss = 0.0
    return {"logits": logits_pad[:B, :O], "loss": 0.0}


def init_params(key, vocab_size, embedding_dim, output_dim, pad_idx):
    """Deterministic re-implementation of TextClassifier._init_weights."""
    k_emb, k_fc = jax.random.split(key)
    embedding = 0.02 * jax.random.normal(k_emb, (vocab_size, embedding_dim),
                                         dtype=jnp.float32)
    embedding = embedding.at[pad_idx].set(0.0)             # padding_idx row -> 0
    fc_weight = 0.02 * jax.random.normal(k_fc, (output_dim, embedding_dim),
                                         dtype=jnp.float32)
    fc_bias = jnp.zeros((1, output_dim), dtype=jnp.float32)
    return embedding, fc_weight, fc_bias


if __name__ == "__main__":
    # Small, deterministic synthetic setup.
    vocab = {"<pad>": 0}
    vocab.update({f"tok{i}": i for i in range(1, 32)})     # vocab_size = 32
    vocab_json = json.dumps(vocab)                         # stands in for vocab_file
    vocab = json.loads(vocab_json)
    vocab_size = len(vocab)
    pad_idx = vocab["<pad>"]

    B, S = 2, 8
    embedding_dim = 32
    output_dim = 8

    key = jax.random.PRNGKey(0)
    k_params, k_ids = jax.random.split(key)

    embedding, fc_weight, fc_bias = init_params(
        k_params, vocab_size, embedding_dim, output_dim, pad_idx)

    # Token ids in [1, vocab_size), then pad the tail of each sequence.
    input_ids = jax.random.randint(k_ids, (B, S), 1, vocab_size, dtype=jnp.int32)
    lengths = jnp.array([8, 5], dtype=jnp.int32)
    pos = jnp.arange(S, dtype=jnp.int32)[None, :]
    input_mask = (pos < lengths[:, None]).astype(jnp.float32)
    input_ids = jnp.where(input_mask > 0, input_ids, pad_idx).astype(jnp.int32)

    out = text_classifier_forward(input_ids, input_mask,
                                  embedding, fc_weight, fc_bias)
    logits = jax.block_until_ready(out["logits"])

    # Pure-JAX reference (f32) of the same forward for a sanity check.
    emb_rows = embedding[input_ids]                                   # (B, S, D)
    pooled = jnp.sum(emb_rows * input_mask[:, :, None], axis=1)
    cnt = jnp.maximum(jnp.sum(input_mask, axis=1, keepdims=True), 1.0)
    ref_logits = (pooled / cnt) @ fc_weight.T + fc_bias

    assert logits.shape == (B, output_dim)
    assert out["loss"] == 0.0
    assert bool(jnp.all(jnp.isfinite(logits)))
    assert bool(jnp.allclose(logits, ref_logits, atol=1e-4, rtol=1e-3))
    print("KERNEL_OK")
</pallas_src>

<mosaic_0001>
module attributes {stable_mosaic.version = 11 : i64} {
  func.func @_text_classifier_kernel(%arg0: i32, %arg1: memref<64xi32, #tpu.memory_space<smem>>, %arg2: memref<64xi32, #tpu.memory_space<smem>>, %arg3: memref<32x32xf32, #tpu.memory_space<vmem>>, %arg4: memref<32x128xf32, #tpu.memory_space<vmem>>, %arg5: memref<1x128xf32, #tpu.memory_space<vmem>>, %arg6: memref<8x128xf32, #tpu.memory_space<vmem>>, %arg7: memref<8x32xf32, #tpu.memory_space<vmem>>, %arg8: memref<8x1xf32, #tpu.memory_space<vmem>>) attributes {dimension_semantics = [#tpu.dimension_semantics<parallel>], iteration_bounds = array<i64: 1>, scalar_prefetch = 2 : i64, scratch_operands = 2 : i64, tpu.core_type = #tpu.core_type<tc>, window_params = [{pipeline_mode = #tpu.pipeline_mode<synchronous>, transform_indices = @transform_0, window_bounds = array<i64: 32, 32>}, {pipeline_mode = #tpu.pipeline_mode<synchronous>, transform_indices = @transform_1, window_bounds = array<i64: 32, 128>}, {pipeline_mode = #tpu.pipeline_mode<synchronous>, transform_indices = @transform_2, window_bounds = array<i64: 1, 128>}, {transform_indices = @transform_3, window_bounds = array<i64: 8, 128>}]} {
    %c0_i32 = arith.constant 0 : i32
    %c8_i32 = arith.constant 8 : i32
    %0 = arith.addi %c0_i32, %c8_i32 : i32
    %c1_i32 = arith.constant 1 : i32
    scf.for %arg9 = %c0_i32 to %0 step %c1_i32  : i32 {
      %c1_i32_11 = arith.constant 1 : i32
      %13 = arith.muli %arg9, %c1_i32_11 : i32
      %c0_i32_12 = arith.constant 0 : i32
      %14 = arith.addi %c0_i32_12, %13 : i32
      %c8_i32_13 = arith.constant 8 : i32
      %15 = arith.muli %arg0, %c8_i32_13 : i32
      %16 = arith.addi %15, %14 : i32
      %c8_i32_14 = arith.constant 8 : i32
      %17 = arith.muli %16, %c8_i32_14 : i32
      %cst_15 = arith.constant 0.000000e+00 : f32
      %18 = vector.broadcast %cst_15 : f32 to vector<1x32xf32>
      %cst_16 = arith.constant 0.000000e+00 : f32
      %19 = vector.broadcast %cst_16 : f32 to vector<1x1xf32>
      %c0_i32_17 = arith.constant 0 : i32
      %20 = arith.addi %17, %c0_i32_17 : i32
      %21 = arith.index_cast %20 : i32 to index
      %22 = memref.load %arg1[%21] : memref<64xi32, #tpu.memory_space<smem>>
      %23 = arith.addi %17, %c0_i32_17 : i32
      %24 = arith.index_cast %23 : i32 to index
      %25 = memref.load %arg2[%24] : memref<64xi32, #tpu.memory_space<smem>>
      %26 = arith.sitofp %25 : i32 to f32
      %27 = arith.index_cast %22 : i32 to index
      %c0_18 = arith.constant 0 : index
      %28 = vector.load %arg3[%27, %c0_18] : memref<32x32xf32, #tpu.memory_space<vmem>>, vector<1x32xf32>
      %29 = vector.broadcast %26 : f32 to vector<1x32xf32>
      %30 = arith.mulf %29, %28 : vector<1x32xf32>
      %31 = arith.addf %18, %30 : vector<1x32xf32>
      %32 = vector.broadcast %26 : f32 to vector<1x1xf32>
      %33 = arith.addf %19, %32 : vector<1x1xf32>
      %c1_i32_19 = arith.constant 1 : i32
      %34 = arith.addi %17, %c1_i32_19 : i32
      %35 = arith.index_cast %34 : i32 to index
      %36 = memref.load %arg1[%35] : memref<64xi32, #tpu.memory_space<smem>>
      %37 = arith.addi %17, %c1_i32_19 : i32
      %38 = arith.index_cast %37 : i32 to index
      %39 = memref.load %arg2[%38] : memref<64xi32, #tpu.memory_space<smem>>
      %40 = arith.sitofp %39 : i32 to f32
      %41 = arith.index_cast %36 : i32 to index
      %c0_20 = arith.constant 0 : index
      %42 = vector.load %arg3[%41, %c0_20] : memref<32x32xf32, #tpu.memory_space<vmem>>, vector<1x32xf32>
      %43 = vector.broadcast %40 : f32 to vector<1x32xf32>
      %44 = arith.mulf %43, %42 : vector<1x32xf32>
      %45 = arith.addf %31, %44 : vector<1x32xf32>
      %46 = vector.broadcast %40 : f32 to vector<1x1xf32>
      %47 = arith.addf %33, %46 : vector<1x1xf32>
      %c2_i32 = arith.constant 2 : i32
      %48 = arith.addi %17, %c2_i32 : i32
      %49 = arith.index_cast %48 : i32 to index
      %50 = memref.load %arg1[%49] : memref<64xi32, #tpu.memory_space<smem>>
      %51 = arith.addi %17, %c2_i32 : i32
      %52 = arith.index_cast %51 : i32 to index
      %53 = memref.load %arg2[%52] : memref<64xi32, #tpu.memory_space<smem>>
      %54 = arith.sitofp %53 : i32 to f32
      %55 = arith.index_cast %50 : i32 to index
      %c0_21 = arith.constant 0 : index
      %56 = vector.load %arg3[%55, %c0_21] : memref<32x32xf32, #tpu.memory_space<vmem>>, vector<1x32xf32>
      %57 = vector.broadcast %54 : f32 to vector<1x32xf32>
      %58 = arith.mulf %57, %56 : vector<1x32xf32>
      %59 = arith.addf %45, %58 : vector<1x32xf32>
      %60 = vector.broadcast %54 : f32 to vector<1x1xf32>
      %61 = arith.addf %47, %60 : vector<1x1xf32>
      %c3_i32 = arith.constant 3 : i32
      %62 = arith.addi %17, %c3_i32 : i32
      %63 = arith.index_cast %62 : i32 to index
      %64 = memref.load %arg1[%63] : memref<64xi32, #tpu.memory_space<smem>>
      %65 = arith.addi %17, %c3_i32 : i32
      %66 = arith.index_cast %65 : i32 to index
      %67 = memref.load %arg2[%66] : memref<64xi32, #tpu.memory_space<smem>>
      %68 = arith.sitofp %67 : i32 to f32
      %69 = arith.index_cast %64 : i32 to index
      %c0_22 = arith.constant 0 : index
      %70 = vector.load %arg3[%69, %c0_22] : memref<32x32xf32, #tpu.memory_space<vmem>>, vector<1x32xf32>
      %71 = vector.broadcast %68 : f32 to vector<1x32xf32>
      %72 = arith.mulf %71, %70 : vector<1x32xf32>
      %73 = arith.addf %59, %72 : vector<1x32xf32>
      %74 = vector.broadcast %68 : f32 to vector<1x1xf32>
      %75 = arith.addf %61, %74 : vector<1x1xf32>
      %c4_i32 = arith.constant 4 : i32
      %76 = arith.addi %17, %c4_i32 : i32
      %77 = arith.index_cast %76 : i32 to index
      %78 = memref.load %arg1[%77] : memref<64xi32, #tpu.memory_space<smem>>
      %79 = arith.addi %17, %c4_i32 : i32
      %80 = arith.index_cast %79 : i32 to index
      %81 = memref.load %arg2[%80] : memref<64xi32, #tpu.memory_space<smem>>
      %82 = arith.sitofp %81 : i32 to f32
      %83 = arith.index_cast %78 : i32 to index
      %c0_23 = arith.constant 0 : index
      %84 = vector.load %arg3[%83, %c0_23] : memref<32x32xf32, #tpu.memory_space<vmem>>, vector<1x32xf32>
      %85 = vector.broadcast %82 : f32 to vector<1x32xf32>
      %86 = arith.mulf %85, %84 : vector<1x32xf32>
      %87 = arith.addf %73, %86 : vector<1x32xf32>
      %88 = vector.broadcast %82 : f32 to vector<1x1xf32>
      %89 = arith.addf %75, %88 : vector<1x1xf32>
      %c5_i32 = arith.constant 5 : i32
      %90 = arith.addi %17, %c5_i32 : i32
      %91 = arith.index_cast %90 : i32 to index
      %92 = memref.load %arg1[%91] : memref<64xi32, #tpu.memory_space<smem>>
      %93 = arith.addi %17, %c5_i32 : i32
      %94 = arith.index_cast %93 : i32 to index
      %95 = memref.load %arg2[%94] : memref<64xi32, #tpu.memory_space<smem>>
      %96 = arith.sitofp %95 : i32 to f32
      %97 = arith.index_cast %92 : i32 to index
      %c0_24 = arith.constant 0 : index
      %98 = vector.load %arg3[%97, %c0_24] : memref<32x32xf32, #tpu.memory_space<vmem>>, vector<1x32xf32>
      %99 = vector.broadcast %96 : f32 to vector<1x32xf32>
      %100 = arith.mulf %99, %98 : vector<1x32xf32>
      %101 = arith.addf %87, %100 : vector<1x32xf32>
      %102 = vector.broadcast %96 : f32 to vector<1x1xf32>
      %103 = arith.addf %89, %102 : vector<1x1xf32>
      %c6_i32 = arith.constant 6 : i32
      %104 = arith.addi %17, %c6_i32 : i32
      %105 = arith.index_cast %104 : i32 to index
      %106 = memref.load %arg1[%105] : memref<64xi32, #tpu.memory_space<smem>>
      %107 = arith.addi %17, %c6_i32 : i32
      %108 = arith.index_cast %107 : i32 to index
      %109 = memref.load %arg2[%108] : memref<64xi32, #tpu.memory_space<smem>>
      %110 = arith.sitofp %109 : i32 to f32
      %111 = arith.index_cast %106 : i32 to index
      %c0_25 = arith.constant 0 : index
      %112 = vector.load %arg3[%111, %c0_25] : memref<32x32xf32, #tpu.memory_space<vmem>>, vector<1x32xf32>
      %113 = vector.broadcast %110 : f32 to vector<1x32xf32>
      %114 = arith.mulf %113, %112 : vector<1x32xf32>
      %115 = arith.addf %101, %114 : vector<1x32xf32>
      %116 = vector.broadcast %110 : f32 to vector<1x1xf32>
      %117 = arith.addf %103, %116 : vector<1x1xf32>
      %c7_i32 = arith.constant 7 : i32
      %118 = arith.addi %17, %c7_i32 : i32
      %119 = arith.index_cast %118 : i32 to index
      %120 = memref.load %arg1[%119] : memref<64xi32, #tpu.memory_space<smem>>
      %121 = arith.addi %17, %c7_i32 : i32
      %122 = arith.index_cast %121 : i32 to index
      %123 = memref.load %arg2[%122] : memref<64xi32, #tpu.memory_space<smem>>
      %124 = arith.sitofp %123 : i32 to f32
      %125 = arith.index_cast %120 : i32 to index
      %c0_26 = arith.constant 0 : index
      %126 = vector.load %arg3[%125, %c0_26] : memref<32x32xf32, #tpu.memory_space<vmem>>, vector<1x32xf32>
      %127 = vector.broadcast %124 : f32 to vector<1x32xf32>
      %128 = arith.mulf %127, %126 : vector<1x32xf32>
      %129 = arith.addf %115, %128 : vector<1x32xf32>
      %130 = vector.broadcast %124 : f32 to vector<1x1xf32>
      %131 = arith.addf %117, %130 : vector<1x1xf32>
      %c8_i32_27 = arith.constant 8 : i32
      %132 = arith.index_cast %14 : i32 to index
      %c0_28 = arith.constant 0 : index
      %133 = vector.load %arg7[%132, %c0_28] : memref<8x32xf32, #tpu.memory_space<vmem>>, vector<1x32xf32>
      tpu.vector_store %arg7[%132, %c0_28], %129 {strides = array<i32>} : memref<8x32xf32, #tpu.memory_space<vmem>>, vector<1x32xf32>,
      %134 = arith.index_cast %14 : i32 to index
      %c0_29 = arith.constant 0 : index
      %135 = vector.load %arg8[%134, %c0_29] : memref<8x1xf32, #tpu.memory_space<vmem>>, vector<1x1xf32>
      tpu.vector_store %arg8[%134, %c0_29], %131 {strides = array<i32>} : memref<8x1xf32, #tpu.memory_space<vmem>>, vector<1x1xf32>,
    }
    %c8_i32_0 = arith.constant 8 : i32
    %c0 = arith.constant 0 : index
    %c0_1 = arith.constant 0 : index
    %1 = vector.load %arg7[%c0, %c0_1] : memref<8x32xf32, #tpu.memory_space<vmem>>, vector<8x32xf32>
    %c0_2 = arith.constant 0 : index
    %c0_3 = arith.constant 0 : index
    %2 = vector.load %arg8[%c0_2, %c0_3] : memref<8x1xf32, #tpu.memory_space<vmem>>, vector<8x1xf32>
    %cst = arith.constant 1.000000e+00 : f32
    %3 = vector.broadcast %cst : f32 to vector<8x1xf32>
    %4 = arith.maximumf %2, %3 : vector<8x1xf32>
    %5 = vector.broadcast %4 : vector<8x1xf32> to vector<8x32xf32>
    %6 = arith.divf %1, %5 : vector<8x32xf32>
    %c0_4 = arith.constant 0 : index
    %c0_5 = arith.constant 0 : index
    %7 = vector.load %arg4[%c0_4, %c0_5] : memref<32x128xf32, #tpu.memory_space<vmem>>, vector<32x128xf32>
    %cst_6 = arith.constant dense<0.000000e+00> : vector<8x128xf32>
    %8 = tpu.matmul %6, %7, %cst_6 {dimension_numbers = #tpu.dot_dimension_numbers<[1], [0], [0], [1], [0, 0, 1, 1], [], []>} : vector<8x32xf32>, vector<32x128xf32>, vector<8x128xf32> -> vector<8x128xf32>
    %c0_7 = arith.constant 0 : index
    %c0_8 = arith.constant 0 : index
    %9 = vector.load %arg5[%c0_7, %c0_8] : memref<1x128xf32, #tpu.memory_space<vmem>>, vector<1x128xf32>
    %10 = vector.broadcast %9 : vector<1x128xf32> to vector<8x128xf32>
    %11 = arith.addf %8, %10 : vector<8x128xf32>
    %c0_9 = arith.constant 0 : index
    %c0_10 = arith.constant 0 : index
    %12 = vector.load %arg6[%c0_9, %c0_10] : memref<8x128xf32, #tpu.memory_space<vmem>>, vector<8x128xf32>
    tpu.vector_store %arg6[%c0_9, %c0_10], %11 {strides = array<i32>} : memref<8x128xf32, #tpu.memory_space<vmem>>, vector<8x128xf32>,
    return
  }
  func.func @transform_0(%arg0: i32, %arg1: memref<64xi32, #tpu.memory_space<smem>>, %arg2: memref<64xi32, #tpu.memory_space<smem>>) -> (i32, i32) {
    %c0_i32 = arith.constant 0 : i32
    %c0_i32_0 = arith.constant 0 : i32
    %c0_i32_1 = arith.constant 0 : i32
    return %c0_i32, %c0_i32_0 : i32, i32
  }
  func.func @transform_1(%arg0: i32, %arg1: memref<64xi32, #tpu.memory_space<smem>>, %arg2: memref<64xi32, #tpu.memory_space<smem>>) -> (i32, i32) {
    %c0_i32 = arith.constant 0 : i32
    %c0_i32_0 = arith.constant 0 : i32
    %c0_i32_1 = arith.constant 0 : i32
    return %c0_i32, %c0_i32_0 : i32, i32
  }
  func.func @transform_2(%arg0: i32, %arg1: memref<64xi32, #tpu.memory_space<smem>>, %arg2: memref<64xi32, #tpu.memory_space<smem>>) -> (i32, i32) {
    %c0_i32 = arith.constant 0 : i32
    %c0_i32_0 = arith.constant 0 : i32
    %c0_i32_1 = arith.constant 0 : i32
    return %c0_i32, %c0_i32_0 : i32, i32
  }
  func.func @transform_3(%arg0: i32, %arg1: memref<64xi32, #tpu.memory_space<smem>>, %arg2: memref<64xi32, #tpu.memory_space<smem>>) -> (i32, i32) {
    %c0_i32 = arith.constant 0 : i32
    %c0_i32_0 = arith.constant 0 : i32
    return %arg0, %c0_i32 : i32, i32
  }
}

</mosaic_0001>

<bundles_post_ra>
// kernel: tpu_custom_call.1
= control target key start
LH: loop header
LB: loop body
LE: loop exit
PB: predicated region body
PF: predicated region fallthrough
CT: control target
= control target key end

     0   :  { %s410_s18 = smov [#allocation5]   ;;  %s502_s0 = inlined_call_operand.hbm [shape: s32[64], index: 0, kind: input, shape index: {}]   ;;  %s503_s2 = inlined_call_operand.hbm [shape: f32[32,32], index: 2, kind: input, shape index: {}]   ;;  %s504_s3 = inlined_call_operand.hbm [shape: f32[32,128], index: 3, kind: input, shape index: {}]   ;;  %s505_s4 = inlined_call_operand.vmem [shape: f32[1,128], index: 4, kind: input, shape index: {}]   ;;  %s506_s5 = inlined_call_operand.hbm [shape: f32[8,128], index: 5, kind: output, shape index: {}]   ;;  %s507_s1 = inlined_call_operand.vmem [shape: s32[64], index: 1, kind: input, shape index: {}]  }
   0x1   :  { %11 = dma.hbm_to_smem %s502_s0, 16, %s410_s18, [#allocation4] }
   0x2   :  { %s12_s23 = sshll.u32 %s507_s1, 4  ;;  %s13_s23 = int_to_ptr.vmem [resolvable:$true] %s12_s23 }
   0x3   :  { %s322_s24 = scalar_lea.vmem %s13_s23, 16  ;;  %p327_p1 = scmp.lt.s32.totalorder %s13_s23, %s13_s23 }
   0x4   :  { %p323_p0 = scmp.ne.s32.totalorder %s13_s23, %s322_s24  ;;  %p328_p2 = scmp.lt.s32.totalorder %s322_s24, %s322_s24 }
   0x6   :  { %p329_p3 = por %p328_p2, %p327_p1 }
   0x8   :  { %p330_p4 = pnand %p329_p3, %p323_p0 }
   0xa   :  { %333 = shalt.err (!%p330_p4)  }
   0xb   :  { %s411_s25 = smov [#allocation6]  }
   0xc   :  { %15 = dma.vmem_to_smem %s13_s23, 16, %s411_s25, [#allocation4] }
   0xd   :  { %398 = dma.done.wait [#allocation4], 32 }
   0xe   :  { %399 = vsyncadd [#allocation4], 4294967264 }
   0xf   :  { %17 = sfence }
  0x10   :  { %18 = vsyncpa [#allocation8], 0 }
  0x11   :  { %19 = vsyncpa [#allocation11], 0 }
  0x12   :  { %20 = vsyncpa [#allocation9], 0  ;;  %s412_s0 = smov [#allocation7]  }
  0x13   :  { %s26_s26 = sshll.u32 %s412_s0, 4  ;;  %s27_s26 = int_to_ptr.vmem [resolvable:$true] %s26_s26 }
  0x14   :  { %s342_s1 = scalar_lea.vmem %s27_s26, 512  ;;  %p347_p6 = scmp.lt.s32.totalorder %s27_s26, %s27_s26 }
  0x15   :  { %p343_p5 = scmp.ne.s32.totalorder %s27_s26, %s342_s1  ;;  %p348_p7 = scmp.lt.s32.totalorder %s342_s1, %s342_s1 }
  0x17   :  { %p349_p8 = por %p348_p7, %p347_p6 }
  0x19   :  { %p350_p9 = pnand %p349_p8, %p343_p5 }
  0x1b   :  { %353 = shalt.err (!%p350_p9)
}
  0x1c   :  { %s413_s27 = smov 128   ;;  %s414_s28 = smov 8  }
  0x1d   :  { %32 = dma.hbm_to_vmem [thread:$0]  %s503_s2, 512, %s27_s26, [#allocation8], %s413_s27, %s413_s27, %s414_s28  }
  0x1e   :  { %s415_s6 = smov [#allocation10]  }
  0x1f   :  { %s38_s7 = sshll.u32 %s415_s6, 4  ;;  %s39_s7 = int_to_ptr.vmem [resolvable:$true] %s38_s7 }
  0x20   :  { %s362_s8 = scalar_lea.vmem %s39_s7, 512  ;;  %p367_p11 = scmp.lt.s32.totalorder %s39_s7, %s39_s7 }
  0x21   :  { %p363_p10 = scmp.ne.s32.totalorder %s39_s7, %s362_s8  ;;  %p368_p12 = scmp.lt.s32.totalorder %s362_s8, %s362_s8 }
  0x23   :  { %p369_p13 = por %p368_p12, %p367_p11 }
  0x25   :  { %p370_p0 = pnand %p369_p13, %p363_p10 }
  0x27   :  { %373 = shalt.err (!%p370_p0)
}
  0x28   :  { %44 = dma.hbm_to_vmem [thread:$0]  %s504_s3, 512, %s39_s7, [#allocation11], %s413_s27, %s413_s27, %s414_s28  }
  0x29   :  { %400 = dma.done.wait [#allocation8], 512  }
  0x2a   :  { %401 = vsyncadd [#allocation8], 4294966784 }
  0x2b   :  { %402 = dma.done.wait [#allocation11], 512  }
  0x2c   :  { %403 = vsyncadd [#allocation11], 4294966784  ;;  %s462_s11 = smov 0  }
  0x2d LB: > { %s468_s2 = sshll.u32 %s408_s11, 3  ;;  %vm145_vm0 = vcmask 0   ;;  %vm142_vm1 = vcmask 253952   ;;  %s408_s11 = sphi %s462_s11, %s58_s11  }
  0x2e   : > { %s62_s3 = sld [smem:[#allocation5 + %s468_s2]]  ;;  %s71_s12 = sadd.s32 1, %s468_s2 }
  0x2f   : > { %s63_s13 = sld [smem:[#allocation6 + %s468_s2]]  ;;  %s81_s14 = sadd.s32 2, %s468_s2 }
  0x30   : > { %s72_s15 = sld [smem:[#allocation5 + %s71_s12]]  ;;  %s91_s16 = sadd.s32 3, %s468_s2 }
  0x31   : > { %s73_s17 = sld [smem:[#allocation6 + %s71_s12]]  ;;  %s101_s18 = sadd.s32 4, %s468_s2 }
  0x32   : > { %s82_s19 = sld [smem:[#allocation5 + %s81_s14]]  ;;  %s111_s20 = sadd.s32 5, %s468_s2 }
  0x33   : > { %s83_s21 = sld [smem:[#allocation6 + %s81_s14]]  ;;  %s121_s22 = sadd.s32 6, %s468_s2 }
  0x34   : > { %s92_s23 = sld [smem:[#allocation5 + %s91_s16]]  ;;  %s65_s25 = scalar_lea.vmem [#allocation7], %s62_s3 }
  0x35   : > { %s64_s24 = scvt.s32.f32 %s63_s13  ;;  %v66_v0 = vld [vmem:[%s65_s25] sm:$0x1]  ;;  %s93_s0 = sld [smem:[#allocation6 + %s91_s16]] }
  0x36   : > { %s102_s26 = sld [smem:[#allocation5 + %s101_s18]]  ;;  %s75_s27 = scalar_lea.vmem [#allocation7], %s72_s15 }
  0x37   : > { %v67_v1 = vstv %s64_s24  ;;  %s74_s1 = scvt.s32.f32 %s73_s17  ;;  %v76_v2 = vld [vmem:[%s75_s27] sm:$0x1]  ;;  %s478_s28 = sld [smem:[#allocation6 + %s101_s18]] }
  0x38   : > { %v68_v3 = vmul.f32 %v67_v1, %v66_v0  ;;  %s480_s29 = sld [smem:[#allocation5 + %s111_s20]]  ;;  %s85_s6 = scalar_lea.vmem [#allocation7], %s82_s19 }
  0x39   : > { %v77_v4 = vstv %s74_s1  ;;  %s84_s30 = scvt.s32.f32 %s83_s21  ;;  %v86_v5 = vld [vmem:[%s85_s6] sm:$0x1]  ;;  %s482_s7 = sld [smem:[#allocation6 + %s111_s20]] }
  0x3a   : > { %v78_v6 = vmul.f32 %v77_v4, %v76_v2  ;;  %s484_s8 = sld [smem:[#allocation5 + %s121_s22]]  ;;  %v80_v7 = vadd.f32 %v77_v4, %v67_v1  ;;  %s95_s10 = scalar_lea.vmem [#allocation7], %s92_s23 }
  0x3b   : > { %v87_v8 = vstv %s84_s30  ;;  %s94_s9 = scvt.s32.f32 %s93_s0  ;;  %v96_v9 = vld [vmem:[%s95_s10] sm:$0x1]  ;;  %s123_s3 = sld [smem:[#allocation6 + %s121_s22]] }
  0x3c   : > { %v79_v10 = vadd.f32 %v78_v6, %v68_v3  ;;  %v88_v11 = vmul.f32 %v87_v8, %v86_v5  ;;  %s131_s12 = sadd.s32 7, %s468_s2  ;;  %v90_v12 = vadd.f32 %v87_v8, %v80_v7  ;;  %s105_s14 = scalar_lea.vmem [#allocation7], %s102_s26 }
  0x3d   : > { %v97_v13 = vstv %s94_s9  ;;  %s104_s13 = scvt.s32.f32 %s478_s28  ;;  %v106_v14 = vld [vmem:[%s105_s14] sm:$0x1]  ;;  %s132_s15 = sld [smem:[#allocation5 + %s131_s12]] }
  0x3e   : > { %v89_v15 = vadd.f32 %v88_v11, %v79_v10  ;;  %v98_v16 = vmul.f32 %v97_v13, %v96_v9  ;;  %s133_s16 = sld [smem:[#allocation6 + %s131_s12]]  ;;  %v100_v17 = vadd.f32 %v97_v13, %v90_v12  ;;  %s115_s18 = scalar_lea.vmem [#allocation7], %s480_s29 }
  0x3f   : > { %v107_v18 = vstv %s104_s13  ;;  %s114_s17 = scvt.s32.f32 %s482_s7  ;;  %v116_v19 = vld [vmem:[%s115_s18] sm:$0x1]  ;;  %s144_s22 = scalar_lea.vmem [#allocation3], %s408_s11 }
  0x40   : > { %v99_v20 = vadd.f32 %v98_v16, %v89_v15  ;;  %v108_v21 = vmul.f32 %v107_v18, %v106_v14  ;;  %v110_v22 = vadd.f32 %v107_v18, %v100_v17  ;;  %s125_s19 = scalar_lea.vmem [#allocation7], %s484_s8  ;;  %s141_s23 = scalar_lea.vmem [#allocation2], %s408_s11 }
  0x41   : > { %v117_v23 = vstv %s114_s17  ;;  %s124_s2 = scvt.s32.f32 %s123_s3  ;;  %v126_v24 = vld [vmem:[%s125_s19] sm:$0x1]  ;;  %s58_s11 = sadd.s32 1, %s408_s11  }
  0x42   : > { %v109_v25 = vadd.f32 %v108_v21, %v99_v20  ;;  %v118_v26 = vmul.f32 %v117_v23, %v116_v19  ;;  %v120_v27 = vadd.f32 %v117_v23, %v110_v22  ;;  %p55_p1 = scmp.ge.s32.totalorder %s58_s11, 8  }
  0x43   : > { %v127_v28 = vstv %s124_s2  ;;  %s135_s21 = scalar_lea.vmem [#allocation7], %s132_s15  ;;  %v160_v39 = vld [vmem:[#allocation10 + $0x18] sm:$0xff] (%p55_p1)  ;;  %v416_v40 = vmov (%p55_p1), 0   ;;  %v417_v42 = vmov (%p55_p1), 0.0   ;;  %v159_v43 = vld [vmem:[#allocation10 + $0x10] sm:$0xff] (%p55_p1)  ;;  %vm418_vm2 = vmmov (%p55_p1), 0  }
  0x44   : > { %v119_v29 = vadd.f32 %v118_v26, %v109_v25  ;;  %v128_v30 = vmul.f32 %v127_v28, %v126_v24  ;;  %s134_s20 = scvt.s32.f32 %s133_s16  ;;  %v136_v31 = vld [vmem:[%s135_s21] sm:$0x1]  ;;  %v130_v32 = vadd.f32 %v127_v28, %v120_v27  ;;  %311 = vset.pattern.permute.xlu0 (%p55_p1), %v416_v40  ;;  %282 = vmatprep.subr.mxu0 (%p55_p1), %v417_v42  ;;  %v158_v44 = vld [vmem:[#allocation10 + $0x8] sm:$0xff] (%p55_p1)  ;;  %v157_v45 = vld [vmem:[#allocation10] sm:$0xff] (%p55_p1)  ;;  %vm168_vm3 = vcmask (%p55_p1), 261120   ;;  %s419_s25 = smov (%p55_p1), [#allocation12]  }
  0x45   :  { %283 = vmatpush3.msra.mxu0 (%p55_p1), %v160_v39  ;;  %290 = vmatprep.mubr.msk.f32.mxu0 (%p55_p1), %vm418_vm2, %v417_v42  ;;  %v275_v50 = vld [vmem:[%s505_s4] ss:$0 sm:$0xff] (%p55_p1)  ;;  %s249_s0 = sshll.u32 (%p55_p1), %s419_s25, 4  ;;  %s250_s0 = int_to_ptr.vmem [resolvable:$true] %s249_s0 }
  0x46   : > { %v129_v33 = vadd.f32 %v128_v30, %v119_v29  ;;  %v137_v34 = vstv %s134_s20  ;;  %284 = vmatprep.subr.mxu0 (%p55_p1), %v417_v42  ;;  %s374_s26 = scalar_lea.vmem (%p55_p1), %s250_s0, 128  ;;  %p379_p3 = scmp.lt.s32.totalorder (%p55_p1), %s250_s0, %s250_s0 }
  0x47   : > { %v138_v35 = vmul.f32 %v137_v34, %v136_v31  ;;  %v140_v36 = vadd.f32 %v137_v34, %v130_v32  ;;  %57 = sbr.rel (!%p55_p1) target bundleno = 45 (0x2d), region = 57  ;;  %285 = vmatpush3.msra.mxu0 (%p55_p1), %v159_v43  ;;  %p375_p2 = scmp.ne.s32.totalorder (%p55_p1), %s250_s0, %s374_s26 }
  0x48   :  { %286 = vmatprep.subr.mxu0 (%p55_p1), %v417_v42  ;;  %p380_p4 = scmp.lt.s32.totalorder (%p55_p1), %s374_s26, %s374_s26 }
  0x49   : > { %v139_v37 = vadd.f32 %v138_v35, %v129_v33  ;;  %146 = vst.msk [vmem:[%s144_s22] sm:$0x1] %vm145_vm0, %v140_v36  ;;  %287 = vmatpush3.msra.mxu0 (%p55_p1), %v158_v44 }
  0x4a   :  { %288 = vmatprep.subr.mxu0 (%p55_p1), %v417_v42  ;;  %p381_p5 = por (%p55_p1), %p380_p4, %p379_p3 }
  0x4b   : > { %143 = vst.msk [vmem:[%s141_s23] sm:$0x1] %vm142_vm1, %v139_v37  ;;  %289 = vmatpush3.msra.mxu0 (%p55_p1), %v157_v45 }
  0x4c   :  { %p382_p6 = pnand %p381_p5, %p375_p2 }
  0x50   :  { %v148_v38 = vld [vmem:[#allocation3] sm:$0xff] }
  0x51   :  { %v149_v41 = vmax.f32 %v148_v38, 1.0 }
  0x52   :  { %v147_v47 = vld [vmem:[#allocation2] sm:$0xff] }
  0x53   :  { %152 = vperm.xlu0 %311, %v149_v41  }
  0xce   :  { %v153_v46 = vpop.permute.xlu0 %152 }
  0xcf   :  { %312 = vrcp.f32 %v153_v46 }
  0xdc   :  { %v313_v48 = vpop.eup %312 }
  0xdd   :  { %v156_v49 = vmul.f32 %v313_v48, %v147_v47 }
  0xdf   :  { %291 = vmatmul.mubr.msk.f32.vlgmr.msra.gmra.mxu0 %vm168_vm3, %v156_v49 }
 0x19f   :  { %v238_v51 = vpop.f32.mrf.mxu0 }
 0x1a0   :  { %v239_v52 = vadd.f32 %v275_v50, %v238_v51 }
 0x1a1   :  { %v292_v53 = vpop.f32.mrf.mxu0 }
 0x1a2   :  { %242 = vst [vmem:[#allocation12] sm:$0xff] %v239_v52 }
 0x1a3   :  { %385 = shalt.err (!%p382_p6)
}
 0x1a4   :  { %252 = dma.vmem_to_hbm [thread:$0]  %s250_s0, 128, %s506_s5, [#allocation9]  }
 0x1a5   :  { %404 = dma.done.wait [#allocation9], 128  }
 0x1a6   :  { %405 = vsyncadd [#allocation9], 4294967168 }
 0x1a7   :  { %256 = vsyncpa [#allocation8], 1 }
 0x1a8   :  { %257 = vsyncpa [#allocation11], 1 }
 0x1a9   :  { %258 = vsyncpa [#allocation9], 1 }

</bundles_post_ra>
